<compile_context>
chip_gen: v7x
topology: tpu7x:2x2x1
jax: 0.10.0
libtpu: 0.0.40
codegen_flags: <defaults>
</compile_context>

<pallas_src>
import jax
import jax.numpy as jnp
from jax.experimental import pallas as pl
from jax.experimental.pallas import tpu as pltpu


_TARGET_BLOCK_BYTES = 4 * 1024 * 1024   # ~4 MiB block -> ~16 MiB double-buffered in+out
_MAX_BLOCK_BYTES = 16 * 1024 * 1024     # never exceed this for a single block
_VMEM_LIMIT_BYTES = 32 * 1024 * 1024    # > v5e's 16 MiB default, within v7x's 64 MiB VMEM


def _tanh_kernel(x_ref, o_ref):
    x = x_ref[...]
    if x.dtype == jnp.float32 or x.dtype == jnp.bfloat16:
        # Native-dtype tanh: one EUP op per vreg, no VPU cast round trip.
        o_ref[...] = jnp.tanh(x)
    else:
        # fp16 / promoted inputs: compute in f32, cast back at the store.
        o_ref[...] = jnp.tanh(x.astype(jnp.float32)).astype(o_ref.dtype)


def _round_up(v, m):
    return ((v + m - 1) // m) * m


def _run(x, block_shape, grid, index_map):
    return pl.pallas_call(
        _tanh_kernel,
        out_shape=jax.ShapeDtypeStruct(x.shape, x.dtype),
        grid_spec=pltpu.PrefetchScalarGridSpec(
            num_scalar_prefetch=0,
            grid=grid,
            in_specs=[pl.BlockSpec(block_shape, index_map)],
            out_specs=pl.BlockSpec(block_shape, index_map),
        ),
        compiler_params=pltpu.CompilerParams(
            dimension_semantics=("parallel",),
            vmem_limit_bytes=_VMEM_LIMIT_BYTES,
        ),
    )(x)


def pallas_tanh(x: jax.Array) -> jax.Array:
    """Elementwise tanh via a Pallas TPU kernel.

    Note: torch.nn.Tanh (via torch.exp) rejects integer tensors; here integer
    inputs are promoted to float32 (documented superset of the reference).
    """
    orig_shape = x.shape

    if not jnp.issubdtype(x.dtype, jnp.floating):
        x = x.astype(jnp.float32)

    if x.size == 0:
        return jnp.zeros(orig_shape, x.dtype)

    itemsize = jnp.dtype(x.dtype).itemsize

    # ---- Path A: 0-D / 1-D inputs -> view as (1, n), block along lanes. ----
    if x.ndim < 2:
        x2d = x.reshape(1, -1)  # free for 0-D / 1-D (no relayout)
        n = x2d.shape[1]
        if n * itemsize <= _MAX_BLOCK_BYTES or n <= 128:
            blk1 = n  # single full block (block dims equal full array dims)
        else:
            blk1 = min((_TARGET_BLOCK_BYTES // itemsize // 128) * 128,
                       (n // 128) * 128)
            blk1 = max(blk1, 128)
        out = _run(x2d, (1, blk1), (pl.cdiv(n, blk1),), lambda i: (0, i))
        return out.reshape(orig_shape)

    shape = x.shape
    ndim = x.ndim
    d0 = shape[0]
    slice_elems = x.size // d0
    slice_bytes = slice_elems * itemsize

    # ---- Path B (preferred): original N-D shape, block only dim 0. --------
    # Full trailing dims satisfy the (8,128) block constraint and avoid any
    # reshape / pad / slice traffic in the wrapper.
    if slice_bytes <= _MAX_BLOCK_BYTES:
        blk0 = max(1, _TARGET_BLOCK_BYTES // max(1, slice_bytes))
        blk0 = min(blk0, d0)
        if d0 >= 2:
            # Guarantee >=2 grid steps so both v7x TensorCores get work.
            blk0 = min(blk0, pl.cdiv(d0, 2))
        if ndim == 2 and blk0 != d0:
            # For 2-D arrays dim 0 is the sublane dim of the block: must be a
            # multiple of 8 (or the full dim).
            blk0 = min(d0, max(8, (blk0 // 8) * 8))
        block_shape = (blk0,) + shape[1:]
        zeros = (0,) * (ndim - 1)
        return _run(x, block_shape, (pl.cdiv(d0, blk0),),
                    lambda i: (i,) + zeros)

    # ---- Path C (fallback): a single dim-0 slice is too large for VMEM. ---
    # Merge leading dims (a bitcast when shape[-2] % 8 == 0) and block rows.
    last = shape[-1]
    x2d = x.reshape(-1, last)
    rows = x2d.shape[0]
    row_bytes = last * itemsize
    blk_rows = max(8, ((_TARGET_BLOCK_BYTES // max(1, row_bytes)) // 8) * 8)
    blk_rows = min(blk_rows, rows)
    if rows >= 2:
        blk_rows = min(blk_rows, _round_up(pl.cdiv(rows, 2), 8))
    if blk_rows != rows:
        blk_rows = max(8, (blk_rows // 8) * 8)
    # TODO(synk): if even an 8-row slab exceeds VMEM (last dim > ~500K f32
    # elements), lane blocking would also be needed here.
    out = _run(x2d, (blk_rows, last), (pl.cdiv(rows, blk_rows),),
               lambda i: (i, 0))
    return out.reshape(orig_shape)


if __name__ == "__main__":
    key = jax.random.PRNGKey(0)

    # Small NCHW-shaped input consistent with typical use of the activation.
    x = jax.random.normal(key, (2, 4, 16, 16), dtype=jnp.float32)
    # Large-magnitude values exercise numerical stability (no inf/inf -> NaN).
    x = x.at[0, 0, 0, 0].set(100.0).at[0, 0, 0, 1].set(-100.0)

    y = jax.block_until_ready(pallas_tanh(x))
    ref = jnp.tanh(x)
    assert y.shape == x.shape and y.dtype == x.dtype
    assert jnp.allclose(y, ref, atol=1e-6, rtol=1e-6), "f32 NCHW mismatch"
    assert not jnp.any(jnp.isnan(y)), "NaNs produced for large |x|"

    # bf16: native-dtype tanh path.
    xb = x.astype(jnp.bfloat16)
    yb = jax.block_until_ready(pallas_tanh(xb))
    assert jnp.allclose(yb.astype(jnp.float32), jnp.tanh(xb).astype(jnp.float32),
                        atol=2e-2, rtol=2e-2), "bf16 mismatch"

    # 1-D input: exercises the (1, n) lane-blocked path.
    key2 = jax.random.PRNGKey(0)
    x1 = jax.random.normal(key2, (1000,), dtype=jnp.float32)
    y1 = jax.block_until_ready(pallas_tanh(x1))
    assert jnp.allclose(y1, jnp.tanh(x1), atol=1e-6, rtol=1e-6), "1-D mismatch"

    # 2-D input: exercises the sublane-aligned dim-0 blocking path.
    x2 = jax.random.normal(key2, (16, 256), dtype=jnp.float32)
    y2 = jax.block_until_ready(pallas_tanh(x2))
    assert jnp.allclose(y2, jnp.tanh(x2), atol=1e-6, rtol=1e-6), "2-D mismatch"

    print("KERNEL_OK")
</pallas_src>

<mosaic_0001>
module attributes {stable_mosaic.version = 11 : i64} {
  func.func @_tanh_kernel(%arg0: i32, %arg1: memref<1x4x16x16xf32, #tpu.memory_space<vmem>>, %arg2: memref<1x4x16x16xf32, #tpu.memory_space<vmem>>) attributes {dimension_semantics = [#tpu.dimension_semantics<parallel>], iteration_bounds = array<i64: 2>, scalar_prefetch = 0 : i64, scratch_operands = 0 : i64, tpu.core_type = #tpu.core_type<tc>, window_params = [{transform_indices = @transform_0, window_bounds = array<i64: 1, 4, 16, 16>}, {transform_indices = @transform_1, window_bounds = array<i64: 1, 4, 16, 16>}]} {
    %c0 = arith.constant 0 : index
    %c0_0 = arith.constant 0 : index
    %c0_1 = arith.constant 0 : index
    %c0_2 = arith.constant 0 : index
    %0 = vector.load %arg1[%c0, %c0_0, %c0_1, %c0_2] : memref<1x4x16x16xf32, #tpu.memory_space<vmem>>, vector<1x4x16x16xf32>
    %1 = math.tanh %0 : vector<1x4x16x16xf32>
    %c0_3 = arith.constant 0 : index
    %c0_4 = arith.constant 0 : index
    %c0_5 = arith.constant 0 : index
    %c0_6 = arith.constant 0 : index
    %2 = vector.load %arg2[%c0_3, %c0_4, %c0_5, %c0_6] : memref<1x4x16x16xf32, #tpu.memory_space<vmem>>, vector<1x4x16x16xf32>
    tpu.vector_store %arg2[%c0_3, %c0_4, %c0_5, %c0_6], %1 {strides = array<i32>} : memref<1x4x16x16xf32, #tpu.memory_space<vmem>>, vector<1x4x16x16xf32>,
    return
  }
  func.func @transform_0(%arg0: i32) -> (i32, i32, i32, i32) {
    %c0_i32 = arith.constant 0 : i32
    %c0_i32_0 = arith.constant 0 : i32
    %c0_i32_1 = arith.constant 0 : i32
    %c0_i32_2 = arith.constant 0 : i32
    return %arg0, %c0_i32, %c0_i32_0, %c0_i32_1 : i32, i32, i32, i32
  }
  func.func @transform_1(%arg0: i32) -> (i32, i32, i32, i32) {
    %c0_i32 = arith.constant 0 : i32
    %c0_i32_0 = arith.constant 0 : i32
    %c0_i32_1 = arith.constant 0 : i32
    %c0_i32_2 = arith.constant 0 : i32
    return %arg0, %c0_i32, %c0_i32_0, %c0_i32_1 : i32, i32, i32, i32
  }
}

</mosaic_0001>

<bundles_post_ra>
// kernel: tpu_custom_call.1
= control target key start
LH: loop header
LB: loop body
LE: loop exit
PB: predicated region body
PF: predicated region fallthrough
CT: control target
= control target key end

     0   :  { %6 = vsyncpa [#allocation3], 0  ;;  %s613_s0 = inlined_call_operand.hbm [shape: f32[2,4,16,16], index: 0, kind: input, shape index: {}]   ;;  %s614_s1 = inlined_call_operand.hbm [shape: f32[2,4,16,16], index: 1, kind: output, shape index: {}]  }
   0x1   :  { %8 = vsyncpa [#allocation3 + $0x1], 0 }
   0x2   :  { %9 = vsyncpa [#allocation4], 0 }
   0x3   :  { %11 = vsyncpa [#allocation4 + $0x1], 0  ;;  %s443_s6 = smov 0   ;;  %s445_s7 = smov 0  }
   0x4   :  { %s447_s8 = smov 0   ;;  %s449_s9 = smov 0  }
   0x5 LB: > { %s464_s10 = sadd.s32 4294967295, %s425_s9   ;;  %s247_s11 = sadd.s32 4294967294, %s425_s9   ;;  %s425_s9 = sphi %s449_s9, %s627_s9   ;;  %s421_s8 = sphi %s447_s8, %s626_s8   ;;  %s417_s7 = sphi %s445_s7, %s625_s7   ;;  %s413_s6 = sphi %s443_s6, %s624_s6  }
   0x6   : > { %s468_s12 = sadd.s32 1, %s425_s9   ;;  %s24_s13 = sadd.s32 1, %s421_s8 }
   0x7   : > { %s21_s14 = ssub.s32 %s425_s9, %s468_s12  ;;  %p31_p0 = scmp.ne.s32.totalorder %s421_s8, %s417_s7 }
   0x8   : > { %p22_p1 = scmp.eq.s32.totalorder %s21_s14, 0  ;;  %p32_p2 = scmp.eq.s32.totalorder %s425_s9, 0 }
   0x9   : > { %p37_p3 = scmp.ne.s32.totalorder %s417_s7, %s413_s6  ;;  %p38_p4 = scmp.eq.s32.totalorder %s464_s10, 0 }
   0xa   : > { %s480_s15 = scalar_select %p22_p1, %s421_s8, %s24_s13  }
   0xb   : > { %p482_p5 = por %p32_p2, %p31_p0  ;;  %p486_p6 = por %p38_p4, %p37_p3 }
   0xc   : > { %p61_p7 = scmp.eq.s32.totalorder %s464_s10, 1  ;;  %p67_p8 = scmp.eq.s32.totalorder %s247_s11, 1 }
   0xd   : > { %p275_p10 = scmp.lt.s32.totalorder %s425_s9, 2  ;;  %s87_s20 = sand.u32 1, %s421_s8  }
   0xe   : > { %p493_p11 = por %p61_p7, %p31_p0  ;;  %p497_p12 = por %p67_p8, %p37_p3 }
   0xf   : > { %s261_s21 = sshll.u32 %s425_s9, 10  ;;  %s250_s22 = sshll.u32 %s87_s20, 6 }
  0x10   : > { %s618_s18 = scalar_select %p493_p11, 1, 0 }
  0x11   : > { %s619_s19 = scalar_select %p497_p12, 1, 0 }
  0x12   : > { %s506_s25 = scalar_lea.hbm %s613_s0, %s261_s21  ;;  %s91_s26 = scalar_lea.vmem [#allocation2], %s250_s22 }
  0x13   : > { %s98_s27 = sshll.u32 %s91_s26, 4  ;;  %p510_p13 = pnand %p275_p10, %p482_p5  ;;  %s514_s27 = int_to_ptr.vmem [resolvable:$true] %s98_s27 }
  0x14   : > { %s516_s29 = scalar_lea.sflag [#allocation3], %s87_s20  ;;  %s329_s30 = scalar_lea.hbm %s506_s25, 1024 }
  0x15   : > { %p330_p0 = scmp.ne.s32.totalorder %s506_s25, %s329_s30  ;;  %p331_p1 = pneg %p510_p13 }
  0x16   : > { %s334_s4 = scalar_lea.hbm %s613_s0, 2048  ;;  %p335_p4 = scmp.lt.u32.totalorder %s506_s25, %s613_s0 }
  0x17   : > { %p332_p2 = pnand %p331_p1, %p330_p0  ;;  %p336_p5 = scmp.lt.u32.totalorder %s334_s4, %s329_s30 }
  0x18   : > { %p338_p8 = scmp.lt.u32.totalorder %s329_s30, %s506_s25 }
  0x19   : > { %p333_p3 = pneg %p332_p2  ;;  %p337_p7 = por %p336_p5, %p335_p4 }
  0x1b   : > { %p339_p10 = por %p338_p8, %p337_p7 }
  0x1d   : > { %p340_p9 = pnand %p339_p10, %p333_p3 }
  0x1f   : > { %343 = shalt.err (!%p340_p9)
}
  0x20   : > { %s344_s13 = scalar_lea.vmem %s514_s27, 1024  ;;  %s427_s14 = smov [#allocation2]  }
  0x21   : > { %p345_p0 = scmp.ne.s32.totalorder %s514_s27, %s344_s13  ;;  %s349_s16 = sshll.u32 %s427_s14, 4  ;;  %s350_s16 = int_to_ptr.vmem [resolvable:$false] %s349_s16 }
  0x22   : > { %s351_s20 = scalar_lea.vmem %s350_s16, 2048  ;;  %p352_p11 = scmp.lt.s32.totalorder %s514_s27, %s350_s16 }
  0x23   : > { %p347_p2 = pnand %p345_p0, %p331_p1  ;;  %p353_p4 = scmp.lt.s32.totalorder %s351_s20, %s344_s13 }
  0x25   : > { %p348_p12 = pneg %p347_p2  ;;  %p354_p5 = por %p353_p4, %p352_p11 }
  0x27   : > { %p355_p7 = pnand %p354_p5, %p348_p12 }
  0x29   : > { %358 = shalt.err (!%p355_p7)
}
  0x2a   : > { %s428_s21 = smov 128   ;;  %s429_s22 = smov 8  }
  0x2b   : > { %270 = dma.hbm_to_vmem [thread:$0]  (!%p510_p13), %s506_s25, 1024, %s514_s27, %s516_s29, %s428_s21, %s428_s21, %s429_s22  }
  0x2c   : > { %p253_p9 = scmp.ge.s32.totalorder %s425_s9, 1  ;;  %p106_p1 = scmp.lt.s32.totalorder %s425_s9, 3 }
  0x2e   : > { %p107_p3 = pnand %p253_p9, %p106_p1 }
  0x2f   : > { %s547_s23 = sand.u32 (!%p107_p3), 1, %s417_s7  }
  0x30   : > { %110 = sbr.rel (%p107_p3) target bundleno = 90 (0x5a), region = 24  ;;  %s254_s24 = sshll.u32 (!%p107_p3), %s547_s23, 6 }
  0x31   : > { %s113_s26 = scalar_lea.sflag (!%p107_p3), [#allocation3], %s547_s23  ;;  %s116_s30 = scalar_lea.vmem (!%p107_p3), [#allocation2], %s254_s24 }
  0x37   : > { %404 = dma.done.wait (%p486_p6), %s113_s26, 1024  }
  0x38   : > { %406 = vsyncadd (%p486_p6), %s113_s26, 4294966272  ;;  %v135_v0 = vld [vmem:[%s116_s30] sm:$0xff]  ;;  %v136_v1 = vld [vmem:[%s116_s30 + $0x8] sm:$0xff]  ;;  %vm151_vm0 = vcmask 130048   ;;  %s134_s17 = scalar_lea.vmem [#allocation5], %s254_s24  ;;  %s262_s27 = sshll.u32 %s464_s10, 10 }
  0x39   : > { %v137_v2 = vld [vmem:[%s116_s30 + $0x10] sm:$0xff]  ;;  %313 = vtanh.f32 %v135_v0  ;;  %v138_v3 = vld [vmem:[%s116_s30 + $0x18] sm:$0xff]  ;;  %v139_v4 = vld [vmem:[%s116_s30 + $0x20] sm:$0xff]  ;;  %s174_s25 = sshll.u32 %s134_s17, 4  ;;  %s566_s2 = scalar_lea.hbm %s614_s1, %s262_s27  ;;  %s560_s25 = int_to_ptr.vmem [resolvable:$true] %s174_s25 }
  0x3a   : > { %315 = vtanh.f32 %v136_v1  ;;  %v140_v5 = vld [vmem:[%s116_s30 + $0x28] sm:$0xff]  ;;  %v141_v6 = vld [vmem:[%s116_s30 + $0x30] sm:$0xff]  ;;  %v142_v7 = vld [vmem:[%s116_s30 + $0x38] sm:$0xff]  ;;  %s161_s10 = scalar_lea.sflag [#allocation4], %s547_s23  ;;  %s359_s3 = scalar_lea.vmem %s560_s25, 1024 }
  0x3b   : > { %317 = vtanh.f32 %v137_v2  ;;  %p360_p6 = scmp.ne.s32.totalorder %s560_s25, %s359_s3  ;;  %p621_p11 = scmp.ne.s32.totalorder %s618_s18, 0 }
  0x3c   : > { %319 = vtanh.f32 %v138_v3  ;;  %s430_s4 = smov [#allocation5]  }
  0x3d   : > { %321 = vtanh.f32 %v139_v4  ;;  %p361_p12 = pnand %p360_p6, %p621_p11  ;;  %s363_s5 = sshll.u32 %s430_s4, 4  ;;  %s364_s5 = int_to_ptr.vmem [resolvable:$false] %s363_s5 }
  0x3e   : > { %323 = vtanh.f32 %v140_v5  ;;  %s365_s11 = scalar_lea.vmem %s364_s5, 2048  ;;  %p366_p8 = scmp.lt.s32.totalorder %s560_s25, %s364_s5 }
  0x3f   : > { %325 = vtanh.f32 %v141_v6  ;;  %p362_p13 = pneg %p361_p12  ;;  %p367_p10 = scmp.lt.s32.totalorder %s365_s11, %s359_s3 }
  0x40   : > { %327 = vtanh.f32 %v142_v7 }
  0x41   : > { %p368_p0 = por %p367_p10, %p366_p8 }
  0x43   : > { %v314_v8 = vpop.eup %313  ;;  %p369_p2 = pnand %p368_p0, %p362_p13 }
  0x44   : > { %v316_v9 = vpop.eup %315  ;;  %152 = vst.msk [vmem:[%s134_s17] sm:$0xff] %vm151_vm0, %v314_v8 }
  0x45   : > { %v318_v10 = vpop.eup %317  ;;  %153 = vst.msk [vmem:[%s134_s17 + $0x8] sm:$0xff] %vm151_vm0, %v316_v9 }
  0x46   : > { %v320_v11 = vpop.eup %319  ;;  %154 = vst.msk [vmem:[%s134_s17 + $0x10] sm:$0xff] %vm151_vm0, %v318_v10 }
  0x47   : > { %v322_v12 = vpop.eup %321  ;;  %155 = vst.msk [vmem:[%s134_s17 + $0x18] sm:$0xff] %vm151_vm0, %v320_v11 }
  0x48   : > { %v324_v13 = vpop.eup %323  ;;  %156 = vst.msk [vmem:[%s134_s17 + $0x20] sm:$0xff] %vm151_vm0, %v322_v12 }
  0x49   : > { %v326_v14 = vpop.eup %325  ;;  %157 = vst.msk [vmem:[%s134_s17 + $0x28] sm:$0xff] %vm151_vm0, %v324_v13 }
  0x4a   : > { %v328_v15 = vpop.eup %327  ;;  %158 = vst.msk [vmem:[%s134_s17 + $0x30] sm:$0xff] %vm151_vm0, %v326_v14 }
  0x4b   : > { %159 = vst.msk [vmem:[%s134_s17 + $0x38] sm:$0xff] %vm151_vm0, %v328_v15 }
  0x4c   : > { %372 = shalt.err (!%p369_p2)
}
  0x4d   : > { %s373_s13 = scalar_lea.hbm %s566_s2, 1024  ;;  %s377_s20 = scalar_lea.hbm %s614_s1, 2048 }
  0x4e   : > { %p374_p4 = scmp.ne.s32.totalorder %s566_s2, %s373_s13  ;;  %p378_p9 = scmp.lt.u32.totalorder %s566_s2, %s614_s1 }
  0x4f   : > { %p379_p1 = scmp.lt.u32.totalorder %s377_s20, %s373_s13  ;;  %p381_p6 = scmp.lt.u32.totalorder %s373_s13, %s566_s2 }
  0x50   : > { %p375_p5 = pnand %p374_p4, %p621_p11 }
  0x51   : > { %p380_p3 = por %p379_p1, %p378_p9 }
  0x52   : > { %p376_p7 = pneg %p375_p5 }
  0x53   : > { %p382_p12 = por %p381_p6, %p380_p3 }
  0x55   : > { %p383_p13 = pnand %p382_p12, %p376_p7 }
  0x57   : > { %386 = shalt.err (!%p383_p13)
}
  0x58   : > { %s431_s24 = smov 128   ;;  %s432_s26 = smov 8  }
  0x59   : > { %265 = dma.vmem_to_hbm [thread:$0]  (%p621_p11), %s560_s25, 1024, %s566_s2, %s161_s10, %s431_s24, %s431_s24, %s432_s26  }
  0x5a PF: > { %s189_s30 = sand.u32 1, %s413_s6   ;;  %p622_p8 = scmp.ne.s32.totalorder %s619_s19, 0 }
  0x5b   : > { %p623_p10 = scmp.ge.s32.totalorder %s425_s9, 2  ;;  %s190_s17 = scalar_lea.sflag [#allocation4], %s189_s30 }
  0x5d   : > { %p272_p0 = pnand %p623_p10, %p622_p8 }
  0x5f   : > { %408 = dma.done.wait (!%p272_p0), %s190_s17, 1024  }
  0x60   : > { %410 = vsyncadd (!%p272_p0), %s190_s17, 4294966272  ;;  %p14_p2 = scmp.ge.s32.totalorder %s468_s12, 4   ;;  %s624_s6 = smov %s417_s7 }
  0x61   : > { %s625_s7 = smov %s421_s8  ;;  %s626_s8 = smov %s480_s15 }
  0x62   : > { %s627_s9 = smov %s468_s12  ;;  %16 = sbr.rel (!%p14_p2) target bundleno = 5 (0x5), region = 69 }
  0x69   :  { %195 = vsyncpa [#allocation3], 1 }
  0x6a   :  { %197 = vsyncpa [#allocation3 + $0x1], 1 }
  0x6b   :  { %198 = vsyncpa [#allocation4], 1 }
  0x6c   :  { %200 = vsyncpa [#allocation4 + $0x1], 1 }

</bundles_post_ra>
